<compile_context>
chip_gen: v7x
topology: tpu7x:2x2x1
jax: 0.10.0
libtpu: 0.0.40
codegen_flags: <defaults>
</compile_context>

<pallas_src>
import functools

import jax
import jax.numpy as jnp
from jax.experimental import pallas as pl
from jax.experimental.pallas import tpu as pltpu

LANE = 128
SUBLANE = 8


def _round_up(n, m):
    return ((n + m - 1) // m) * m


def _pad2d(a, rows, cols):
    return jnp.pad(a, ((0, rows - a.shape[0]), (0, cols - a.shape[1])))


def _choose_tile_b(batch, target, in_size, out_p):
    """Sublane-aligned batch tile.

    - big enough to amortize per-grid-step overhead (target ~2048 rows),
    - >= 2 grid steps whenever batch >= 16 (v7x has 2 TensorCores),
    - capped so double-buffered f32 x/out tiles stay under ~28 MiB of VMEM,
    - always a multiple of 8, or exactly == batch for tiny batches (full-dim block).
    """
    target = max(SUBLANE, _round_up(int(target), SUBLANE))
    # VMEM cap: 2 x-bufs (f32) + 2 out-bufs (f32) per row.
    row_bytes = 2 * 4 * (in_size + out_p)
    vmem_cap = max(SUBLANE, ((28 << 20) // row_bytes) // SUBLANE * SUBLANE)
    target = min(target, vmem_cap)

    n_steps = max(pl.cdiv(batch, target), min(2, pl.cdiv(batch, SUBLANE)))
    tile = _round_up(pl.cdiv(batch, n_steps), SUBLANE)
    if tile >= batch:
        return batch  # single block covering the whole batch (block == full array dim)
    return tile


def _mlp_kernel(x_ref, w1_ref, b1_ref, w2_ref, b2_ref, w3_ref, b3_ref, o_ref):
    # x tile arrives f32 straight from HBM; cast to bf16 only for the MXU operands.
    x = x_ref[...].astype(jnp.bfloat16)
    h = jnp.dot(x, w1_ref[...], preferred_element_type=jnp.float32)
    h = jnp.maximum(h + b1_ref[...], 0.0)
    h = jnp.dot(h.astype(jnp.bfloat16), w2_ref[...], preferred_element_type=jnp.float32)
    h = jnp.maximum(h + b2_ref[...], 0.0)
    out = jnp.dot(h.astype(jnp.bfloat16), w3_ref[...], preferred_element_type=jnp.float32)
    o_ref[...] = (out + b3_ref[...]).astype(o_ref.dtype)


@functools.partial(jax.jit, static_argnames=("target_tile_b",))
def fully_connected_net(x, params, *, target_tile_b=2048):
    """Forward pass of Fully_Connected_Net.

    x:      any shape whose leading dim is batch; flattened to (batch, in_size)
    params: dict with w1 (in,100), b1 (1,100), w2 (100,100), b2 (1,100),
            w3 (100,out), b3 (1,out)  (float32; weights padded/cast inside)
    """
    in_size = params["w1"].shape[0]
    hidden = params["w1"].shape[1]
    out_size = params["w3"].shape[1]
    batch = x.shape[0]
    x2d = x.reshape(batch, in_size)          # == input.view(input.size()[0], in_size)
    out_dtype = x2d.dtype

    # Lane-aligned padded sizes for the small dims only (hidden/out). K=784 stays unpadded.
    hid_p = _round_up(hidden, LANE)          # 100 -> 128
    out_p = _round_up(out_size, LANE)        # 10  -> 128

    tile_b = _choose_tile_b(batch, target_tile_b, in_size, out_p)
    grid = (pl.cdiv(batch, tile_b),)

    # Weights/biases: tiny, zero-padded (padded hidden lanes stay exactly 0 through
    # ReLU, padded K rows multiply zeros), cast to bf16 once per call.
    w1 = _pad2d(params["w1"], in_size, hid_p).astype(jnp.bfloat16)
    w2 = _pad2d(params["w2"], hid_p, hid_p).astype(jnp.bfloat16)
    w3 = _pad2d(params["w3"], hid_p, out_p).astype(jnp.bfloat16)
    b1 = _pad2d(params["b1"], 1, hid_p).astype(jnp.float32)
    b2 = _pad2d(params["b2"], 1, hid_p).astype(jnp.float32)
    b3 = _pad2d(params["b3"], 1, out_p).astype(jnp.float32)

    const = lambda i: (0, 0)                 # weights/biases: same block every step

    flops = 2 * batch * (in_size * hid_p + hid_p * hid_p + hid_p * out_p)
    bytes_accessed = (
        x2d.size * x2d.dtype.itemsize
        + (w1.size + w2.size + w3.size) * 2
        + (b1.size + b2.size + b3.size) * 4
        + batch * out_p * 4
    )

    out_padded = pl.pallas_call(
        _mlp_kernel,
        out_shape=jax.ShapeDtypeStruct((batch, out_p), out_dtype),
        grid=grid,
        in_specs=[
            pl.BlockSpec((tile_b, in_size), lambda i: (i, 0)),   # x tile (f32, streamed)
            pl.BlockSpec((in_size, hid_p), const),               # w1 (VMEM-resident)
            pl.BlockSpec((1, hid_p), const),                     # b1
            pl.BlockSpec((hid_p, hid_p), const),                 # w2
            pl.BlockSpec((1, hid_p), const),                     # b2
            pl.BlockSpec((hid_p, out_p), const),                 # w3
            pl.BlockSpec((1, out_p), const),                     # b3
        ],
        out_specs=pl.BlockSpec((tile_b, out_p), lambda i: (i, 0)),
        compiler_params=pltpu.CompilerParams(
            dimension_semantics=("parallel",),
            vmem_limit_bytes=32 * 1024 * 1024,   # raise v5e's 16 MiB default; v6e/v7x default
        ),
        cost_estimate=pl.CostEstimate(
            flops=flops, transcendentals=0, bytes_accessed=bytes_accessed,
        ),
    )(x2d, w1, b1, w2, b2, w3, b3)

    # Lane-dim slice only (output keeps the f32 dtype of the input, matching PyTorch).
    return out_padded[:, :out_size]


def init_params(key, in_size=784, hidden=100, out_size=10, dtype=jnp.float32):
    """Deterministic init mimicking nn.Linear's default U(-1/sqrt(fan_in), 1/sqrt(fan_in))."""
    ks = jax.random.split(key, 6)

    def uniform(k, shape, fan_in):
        bound = 1.0 / jnp.sqrt(jnp.asarray(fan_in, dtype))
        return jax.random.uniform(k, shape, dtype, minval=-bound, maxval=bound)

    return {
        "w1": uniform(ks[0], (in_size, hidden), in_size),
        "b1": uniform(ks[1], (1, hidden), in_size),
        "w2": uniform(ks[2], (hidden, hidden), hidden),
        "b2": uniform(ks[3], (1, hidden), hidden),
        "w3": uniform(ks[4], (hidden, out_size), hidden),
        "b3": uniform(ks[5], (1, out_size), hidden),
    }


def _reference_f32(x, params):
    h = jnp.maximum(x.reshape(x.shape[0], -1) @ params["w1"] + params["b1"], 0.0)
    h = jnp.maximum(h @ params["w2"] + params["b2"], 0.0)
    return h @ params["w3"] + params["b3"]


def _reference_bf16(x, params):
    # Same numerics as the kernel: bf16 matmul operands, f32 accumulation, f32 epilogue.
    bf = jnp.bfloat16
    h = jnp.dot(x.reshape(x.shape[0], -1).astype(bf), params["w1"].astype(bf),
                preferred_element_type=jnp.float32)
    h = jnp.maximum(h + params["b1"], 0.0)
    h = jnp.dot(h.astype(bf), params["w2"].astype(bf), preferred_element_type=jnp.float32)
    h = jnp.maximum(h + params["b2"], 0.0)
    return jnp.dot(h.astype(bf), params["w3"].astype(bf),
                   preferred_element_type=jnp.float32) + params["b3"]


if __name__ == "__main__":
    key = jax.random.PRNGKey(0)
    k_x, k_p = jax.random.split(key)

    batch, in_size, out_size = 2, 784, 10
    # MNIST-style input (N, C, H, W) = (2, 1, 28, 28); forward flattens it to (2, 784).
    x = jax.random.normal(k_x, (batch, 1, 28, 28), dtype=jnp.float32)
    params = init_params(k_p, in_size=in_size, out_size=out_size)

    out = fully_connected_net(x, params)
    out = jax.block_until_ready(out)

    assert out.shape == (batch, out_size)

    # Exact-precision-matched reference (bf16 MXU operands, f32 accumulation).
    ref_matched = _reference_bf16(x, params)
    assert jnp.allclose(out, ref_matched, atol=1e-3, rtol=1e-3)

    # Loose sanity check against the pure-f32 reference (bf16 rounding tolerance).
    ref_f32 = _reference_f32(x, params)
    assert jnp.allclose(out, ref_f32, atol=2e-2, rtol=2e-2)

    print("KERNEL_OK")
</pallas_src>

<mosaic_0001>
module attributes {stable_mosaic.version = 11 : i64} {
  func.func @_mlp_kernel(%arg0: i32, %arg1: memref<2x784xf32, #tpu.memory_space<vmem>>, %arg2: memref<784x128xbf16, #tpu.memory_space<vmem>>, %arg3: memref<1x128xf32, #tpu.memory_space<vmem>>, %arg4: memref<128x128xbf16, #tpu.memory_space<vmem>>, %arg5: memref<1x128xf32, #tpu.memory_space<vmem>>, %arg6: memref<128x128xbf16, #tpu.memory_space<vmem>>, %arg7: memref<1x128xf32, #tpu.memory_space<vmem>>, %arg8: memref<2x128xf32, #tpu.memory_space<vmem>>) attributes {dimension_semantics = [#tpu.dimension_semantics<parallel>], iteration_bounds = array<i64: 1>, scalar_prefetch = 0 : i64, scratch_operands = 0 : i64, tpu.core_type = #tpu.core_type<tc>, window_params = [{transform_indices = @transform_0, window_bounds = array<i64: 2, 784>}, {pipeline_mode = #tpu.pipeline_mode<synchronous>, transform_indices = @transform_1, window_bounds = array<i64: 784, 128>}, {pipeline_mode = #tpu.pipeline_mode<synchronous>, transform_indices = @transform_2, window_bounds = array<i64: 1, 128>}, {pipeline_mode = #tpu.pipeline_mode<synchronous>, transform_indices = @transform_3, window_bounds = array<i64: 128, 128>}, {pipeline_mode = #tpu.pipeline_mode<synchronous>, transform_indices = @transform_4, window_bounds = array<i64: 1, 128>}, {pipeline_mode = #tpu.pipeline_mode<synchronous>, transform_indices = @transform_5, window_bounds = array<i64: 128, 128>}, {pipeline_mode = #tpu.pipeline_mode<synchronous>, transform_indices = @transform_6, window_bounds = array<i64: 1, 128>}, {transform_indices = @transform_7, window_bounds = array<i64: 2, 128>}]} {
    %c0 = arith.constant 0 : index
    %c0_0 = arith.constant 0 : index
    %0 = vector.load %arg1[%c0, %c0_0] : memref<2x784xf32, #tpu.memory_space<vmem>>, vector<2x784xf32>
    %1 = arith.truncf %0 : vector<2x784xf32> to vector<2x784xbf16>
    %c0_1 = arith.constant 0 : index
    %c0_2 = arith.constant 0 : index
    %2 = vector.load %arg2[%c0_1, %c0_2] : memref<784x128xbf16, #tpu.memory_space<vmem>>, vector<784x128xbf16>
    %cst = arith.constant dense<0.000000e+00> : vector<2x128xf32>
    %3 = tpu.matmul %1, %2, %cst {dimension_numbers = #tpu.dot_dimension_numbers<[1], [0], [0], [1], [0, 0, 1, 1], [], []>} : vector<2x784xbf16>, vector<784x128xbf16>, vector<2x128xf32> -> vector<2x128xf32>
    %c0_3 = arith.constant 0 : index
    %c0_4 = arith.constant 0 : index
    %4 = vector.load %arg3[%c0_3, %c0_4] : memref<1x128xf32, #tpu.memory_space<vmem>>, vector<1x128xf32>
    %5 = vector.broadcast %4 : vector<1x128xf32> to vector<2x128xf32>
    %6 = arith.addf %3, %5 : vector<2x128xf32>
    %cst_5 = arith.constant 0.000000e+00 : f32
    %7 = vector.broadcast %cst_5 : f32 to vector<2x128xf32>
    %8 = arith.maximumf %6, %7 : vector<2x128xf32>
    %9 = arith.truncf %8 : vector<2x128xf32> to vector<2x128xbf16>
    %c0_6 = arith.constant 0 : index
    %c0_7 = arith.constant 0 : index
    %10 = vector.load %arg4[%c0_6, %c0_7] : memref<128x128xbf16, #tpu.memory_space<vmem>>, vector<128x128xbf16>
    %cst_8 = arith.constant dense<0.000000e+00> : vector<2x128xf32>
    %11 = tpu.matmul %9, %10, %cst_8 {dimension_numbers = #tpu.dot_dimension_numbers<[1], [0], [0], [1], [0, 0, 1, 1], [], []>} : vector<2x128xbf16>, vector<128x128xbf16>, vector<2x128xf32> -> vector<2x128xf32>
    %c0_9 = arith.constant 0 : index
    %c0_10 = arith.constant 0 : index
    %12 = vector.load %arg5[%c0_9, %c0_10] : memref<1x128xf32, #tpu.memory_space<vmem>>, vector<1x128xf32>
    %13 = vector.broadcast %12 : vector<1x128xf32> to vector<2x128xf32>
    %14 = arith.addf %11, %13 : vector<2x128xf32>
    %cst_11 = arith.constant 0.000000e+00 : f32
    %15 = vector.broadcast %cst_11 : f32 to vector<2x128xf32>
    %16 = arith.maximumf %14, %15 : vector<2x128xf32>
    %17 = arith.truncf %16 : vector<2x128xf32> to vector<2x128xbf16>
    %c0_12 = arith.constant 0 : index
    %c0_13 = arith.constant 0 : index
    %18 = vector.load %arg6[%c0_12, %c0_13] : memref<128x128xbf16, #tpu.memory_space<vmem>>, vector<128x128xbf16>
    %cst_14 = arith.constant dense<0.000000e+00> : vector<2x128xf32>
    %19 = tpu.matmul %17, %18, %cst_14 {dimension_numbers = #tpu.dot_dimension_numbers<[1], [0], [0], [1], [0, 0, 1, 1], [], []>} : vector<2x128xbf16>, vector<128x128xbf16>, vector<2x128xf32> -> vector<2x128xf32>
    %c0_15 = arith.constant 0 : index
    %c0_16 = arith.constant 0 : index
    %20 = vector.load %arg7[%c0_15, %c0_16] : memref<1x128xf32, #tpu.memory_space<vmem>>, vector<1x128xf32>
    %21 = vector.broadcast %20 : vector<1x128xf32> to vector<2x128xf32>
    %22 = arith.addf %19, %21 : vector<2x128xf32>
    %c0_17 = arith.constant 0 : index
    %c0_18 = arith.constant 0 : index
    %23 = vector.load %arg8[%c0_17, %c0_18] : memref<2x128xf32, #tpu.memory_space<vmem>>, vector<2x128xf32>
    tpu.vector_store %arg8[%c0_17, %c0_18], %22 {strides = array<i32>} : memref<2x128xf32, #tpu.memory_space<vmem>>, vector<2x128xf32>,
    return
  }
  func.func @transform_0(%arg0: i32) -> (i32, i32) {
    %c0_i32 = arith.constant 0 : i32
    %c0_i32_0 = arith.constant 0 : i32
    return %arg0, %c0_i32 : i32, i32
  }
  func.func @transform_1(%arg0: i32) -> (i32, i32) {
    %c0_i32 = arith.constant 0 : i32
    %c0_i32_0 = arith.constant 0 : i32
    %c0_i32_1 = arith.constant 0 : i32
    return %c0_i32, %c0_i32_0 : i32, i32
  }
  func.func @transform_2(%arg0: i32) -> (i32, i32) {
    %c0_i32 = arith.constant 0 : i32
    %c0_i32_0 = arith.constant 0 : i32
    %c0_i32_1 = arith.constant 0 : i32
    return %c0_i32, %c0_i32_0 : i32, i32
  }
  func.func @transform_3(%arg0: i32) -> (i32, i32) {
    %c0_i32 = arith.constant 0 : i32
    %c0_i32_0 = arith.constant 0 : i32
    %c0_i32_1 = arith.constant 0 : i32
    return %c0_i32, %c0_i32_0 : i32, i32
  }
  func.func @transform_4(%arg0: i32) -> (i32, i32) {
    %c0_i32 = arith.constant 0 : i32
    %c0_i32_0 = arith.constant 0 : i32
    %c0_i32_1 = arith.constant 0 : i32
    return %c0_i32, %c0_i32_0 : i32, i32
  }
  func.func @transform_5(%arg0: i32) -> (i32, i32) {
    %c0_i32 = arith.constant 0 : i32
    %c0_i32_0 = arith.constant 0 : i32
    %c0_i32_1 = arith.constant 0 : i32
    return %c0_i32, %c0_i32_0 : i32, i32
  }
  func.func @transform_6(%arg0: i32) -> (i32, i32) {
    %c0_i32 = arith.constant 0 : i32
    %c0_i32_0 = arith.constant 0 : i32
    %c0_i32_1 = arith.constant 0 : i32
    return %c0_i32, %c0_i32_0 : i32, i32
  }
  func.func @transform_7(%arg0: i32) -> (i32, i32) {
    %c0_i32 = arith.constant 0 : i32
    %c0_i32_0 = arith.constant 0 : i32
    return %arg0, %c0_i32 : i32, i32
  }
}

</mosaic_0001>

<bundles_post_ra>
// kernel: fully_connected_net.1
= control target key start
LH: loop header
LB: loop body
LE: loop exit
PB: predicated region body
PF: predicated region fallthrough
CT: control target
= control target key end

     0   :  { %v36_v27 = vlaneseq  ;;  %v1179_v35 = vmov 1983009808   ;;  %v1180_v40 = vmov 0.0   ;;  %vm1181_vm0 = vmmov 0   ;;  %s1469_s0 = inlined_call_operand.vmem [shape: f32[2,784], index: 0, kind: input, shape index: {}]   ;;  %s1470_s1 = inlined_call_operand.vmem [shape: bf16[784,128], index: 1, kind: input, shape index: {}]   ;;  %s1471_s2 = inlined_call_operand.vmem [shape: f32[1,128], index: 2, kind: input, shape index: {}]   ;;  %s1472_s3 = inlined_call_operand.vmem [shape: bf16[128,128], index: 3, kind: input, shape index: {}]   ;;  %s1473_s4 = inlined_call_operand.vmem [shape: f32[1,128], index: 4, kind: input, shape index: {}]   ;;  %s1474_s5 = inlined_call_operand.vmem [shape: bf16[128,128], index: 5, kind: input, shape index: {}]   ;;  %s1475_s6 = inlined_call_operand.vmem [shape: f32[1,128], index: 6, kind: input, shape index: {}]   ;;  %s1476_s7 = inlined_call_operand.hbm [shape: f32[2,128], index: 7, kind: output, shape index: {}]  }
   0x1   :  { %v1088_v0 = vld [vmem:[%s1470_s1 + $0x40] sm:$0xff]   ;;  %v1092_v4 = vld [vmem:[%s1470_s1 + $0x48] sm:$0xff]   ;;  %v1096_v8 = vld [vmem:[%s1470_s1 + $0x50] sm:$0xff]   ;;  %v34_v36 = vunpack.c.l.s4 %v1179_v35  ;;  %vm478_vm1 = vcmask 130048  }
   0x2   :  { %v1089_v1 = vld [vmem:[%s1470_s1] sm:$0xff]   ;;  %952 = vmatprep.subr.bf16.mxu0 %v1088_v0  ;;  %v1093_v5 = vld [vmem:[%s1470_s1 + $0x8] sm:$0xff]   ;;  %v1097_v9 = vld [vmem:[%s1470_s1 + $0x10] sm:$0xff]   ;;  %v37_v32 = vshrl.u32 %v36_v27, 7 }
   0x3   :  { %v1090_v2 = vld [vmem:[%s1470_s1 + $0xc0] sm:$0xff]   ;;  %953 = vmatpush3.bf16.msra.mxu0 %v1089_v1  ;;  %v1094_v6 = vld [vmem:[%s1470_s1 + $0xc8] sm:$0xff]   ;;  %v1098_v10 = vld [vmem:[%s1470_s1 + $0xd0] sm:$0xff]   ;;  %v35_v38 = vunpack.c.0.s8 %v34_v36 }
   0x4   :  { %v1091_v3 = vld [vmem:[%s1470_s1 + $0x80] sm:$0xff]   ;;  %974 = vmatprep.subr.bf16.mxu1 %v1090_v2  ;;  %954 = vmatprep.subr.bf16.mxu0 %v1092_v4  ;;  %v1095_v7 = vld [vmem:[%s1470_s1 + $0x88] sm:$0xff]   ;;  %v1099_v11 = vld [vmem:[%s1470_s1 + $0x90] sm:$0xff]  }
   0x5   :  { %975 = vmatpush3.bf16.msra.mxu1 %v1091_v3  ;;  %v1100_v12 = vld [vmem:[%s1470_s1 + $0x58] sm:$0xff]   ;;  %v1104_v16 = vld [vmem:[%s1470_s1 + $0x60] sm:$0xff]   ;;  %v1108_v20 = vld [vmem:[%s1470_s1 + $0x68] sm:$0xff]   ;;  %v38_v41 = vsub.s32 %v35_v38, %v37_v32 }
   0x6   :  { %976 = vmatprep.subr.bf16.mxu1 %v1094_v6  ;;  %v1101_v13 = vld [vmem:[%s1470_s1 + $0x18] sm:$0xff]   ;;  %v1105_v17 = vld [vmem:[%s1470_s1 + $0x20] sm:$0xff]   ;;  %v1109_v21 = vld [vmem:[%s1470_s1 + $0x28] sm:$0xff]  }
   0x7   :  { %955 = vmatpush3.bf16.msra.mxu0 %v1093_v5  ;;  %v1102_v14 = vld [vmem:[%s1470_s1 + $0xd8] sm:$0xff]   ;;  %v1106_v18 = vld [vmem:[%s1470_s1 + $0xe0] sm:$0xff]   ;;  %v1110_v22 = vld [vmem:[%s1470_s1 + $0xe8] sm:$0xff]  }
   0x8   :  { %956 = vmatprep.subr.bf16.mxu0 %v1096_v8  ;;  %v1103_v15 = vld [vmem:[%s1470_s1 + $0x98] sm:$0xff]   ;;  %v1107_v19 = vld [vmem:[%s1470_s1 + $0xa0] sm:$0xff]   ;;  %v1111_v23 = vld [vmem:[%s1470_s1 + $0xa8] sm:$0xff]  }
   0x9   :  { %977 = vmatpush3.bf16.msra.mxu1 %v1095_v7  ;;  %v1112_v24 = vld [vmem:[%s1470_s1 + $0x70] sm:$0xff]   ;;  %v1116_v29 = vld [vmem:[%s1470_s1 + $0x78] sm:$0xff]   ;;  %v28_v33 = vld [vmem:[%s1469_s0] sm:$0xff] }
   0xa   :  { %978 = vmatprep.subr.bf16.mxu1 %v1098_v10  ;;  %v1113_v25 = vld [vmem:[%s1470_s1 + $0x30] sm:$0xff]   ;;  %v1117_v30 = vld [vmem:[%s1470_s1 + $0x38] sm:$0xff]   ;;  %v1120_v37 = vld [vmem:[%s1470_s1 + $0x140] sm:$0xff]   ;;  %v32_v39 = vcombine.high %v28_v33, %v28_v33  ;;  %v39_v42 = vrot.slane %v28_v33, %v38_v41 }
   0xb   :  { %957 = vmatpush3.bf16.msra.mxu0 %v1097_v9  ;;  %v1114_v26 = vld [vmem:[%s1470_s1 + $0xf0] sm:$0xff]   ;;  %v1118_v31 = vld [vmem:[%s1470_s1 + $0xf8] sm:$0xff]   ;;  %v1122_v50 = vld [vmem:[%s1470_s1 + $0x100] sm:$0xff]  }
   0xc   :  { %958 = vmatprep.subr.bf16.mxu0 %v1100_v12  ;;  %v1115_v28 = vld [vmem:[%s1470_s1 + $0xb0] sm:$0xff]   ;;  %v1119_v34 = vld [vmem:[%s1470_s1 + $0xb8] sm:$0xff]   ;;  %v46_v43 = vrot.slane %v32_v39, %v38_v41  ;;  %v47_v44 = vcombine.high %v39_v42, %v39_v42  ;;  %v72_v46 = vpack.c.bf16 %v39_v42, %v39_v42  ;;  %v1123_v51 = vld [vmem:[%s1470_s1 + $0x148] sm:$0xff]  }
   0xd   :  { %979 = vmatpush3.bf16.msra.mxu1 %v1099_v11  ;;  %v1124_v52 = vld [vmem:[%s1470_s1 + $0x108] sm:$0xff]   ;;  %v1125_v53 = vld [vmem:[%s1470_s1 + $0x150] sm:$0xff]   ;;  %v1127_v55 = vld [vmem:[%s1470_s1 + $0x158] sm:$0xff]  }
   0xe   :  { %980 = vmatprep.subr.bf16.mxu1 %v1102_v14  ;;  %v48_v45 = vcombine.high %v46_v43, %v46_v43  ;;  %v74_v47 = vpack.c.bf16 %v46_v43, %v46_v43  ;;  %v73_v48 = vpack.c.bf16 %v47_v44, %v47_v44  ;;  %v1126_v54 = vld [vmem:[%s1470_s1 + $0x110] sm:$0xff]   ;;  %v1137_v56 = vld [vmem:[%s1470_s1 + $0x180] sm:$0xff]   ;;  %v29_v57 = vld [vmem:[%s1469_s0 + $0x8] sm:$0x3f] }
   0xf   :  { %959 = vmatpush3.bf16.msra.mxu0 %v1101_v13  ;;  %v49_v58 = vcombine.high %v29_v57, %v29_v57  ;;  %v56_v59 = vrot.slane %v29_v57, %v38_v41  ;;  %v1128_v60 = vld [vmem:[%s1470_s1 + $0x118] sm:$0xff]   ;;  %v1129_v63 = vld [vmem:[%s1470_s1 + $0x160] sm:$0xff]   ;;  %v1131_v3 = vld [vmem:[%s1470_s1 + $0x168] sm:$0xff]  }
  0x10   :  { %960 = vmatprep.subr.bf16.mxu0 %v1104_v16  ;;  %v75_v49 = vpack.c.bf16 %v48_v45, %v48_v45  ;;  %514 = vmatprep.mubr.bf16.mxu0 %v73_v48  ;;  %v1130_v2 = vld [vmem:[%s1470_s1 + $0x120] sm:$0xff]  }
  0x11   :  { %981 = vmatpush3.bf16.msra.mxu1 %v1103_v15  ;;  %v63_v61 = vrot.slane %v49_v58, %v38_v41  ;;  %v64_v62 = vcombine.high %v56_v59, %v56_v59 }
  0x12   :  { %982 = vmatprep.subr.bf16.mxu1 %v1106_v18  ;;  %554 = vmatprep.mubr.bf16.mxu1 %v75_v49 }
  0x13   :  { %961 = vmatpush3.bf16.msra.mxu0 %v1105_v17  ;;  %v77_v0 = vpack.c.bf16 %v64_v62, %v64_v62  ;;  %v78_v1 = vpack.c.bf16 %v63_v61, %v63_v61 }
  0x14   :  { %962 = vmatprep.subr.bf16.mxu0 %v1108_v20 }
  0x15   :  { %983 = vmatpush3.bf16.msra.mxu1 %v1107_v19 }
  0x16   :  { %984 = vmatprep.subr.bf16.mxu1 %v1110_v22 }
  0x17   :  { %963 = vmatpush3.bf16.msra.mxu0 %v1109_v21 }
  0x18   :  { %964 = vmatprep.subr.bf16.mxu0 %v1112_v24 }
  0x19   :  { %985 = vmatpush3.bf16.msra.mxu1 %v1111_v23 }
  0x1a   :  { %986 = vmatprep.subr.bf16.mxu1 %v1114_v26 }
  0x1b   :  { %965 = vmatpush3.bf16.msra.mxu0 %v1113_v25 }
  0x1c   :  { %966 = vmatprep.subr.bf16.mxu0 %v1116_v29 }
  0x1d   :  { %987 = vmatpush3.bf16.msra.mxu1 %v1115_v28 }
  0x1e   :  { %988 = vmatprep.subr.bf16.mxu1 %v1118_v31 }
  0x1f   :  { %967 = vmatpush3.bf16.msra.mxu0 %v1117_v30 }
  0x20   :  { %996 = vmatprep.subr.bf16.mxu0 %v1120_v37 }
  0x21   :  { %989 = vmatpush3.bf16.msra.mxu1 %v1119_v34 }
  0x22   :  { %1038 = vmatprep.subr.bf16.mxu1 %v1180_v40  ;;  %515 = vmatmul.mubr.bf16.vlgmr.msra.gmra.mrb[0].mxu0 %v72_v46 }
  0x23   :  { %997 = vmatpush3.bf16.msra.mxu0 %v1122_v50  ;;  %594 = vmatprep.mubr.bf16.mxu0 %v77_v0 }
  0x24   :  { %555 = vmatmul.mubr.bf16.vlgmr.msra.gmra.mrb[0].mxu1 %v74_v47  ;;  %998 = vmatprep.subr.bf16.mxu0 %v1123_v51 }
  0x25   :  { %1040 = vmatprep.mubr.msk.bf16.mxu1 %vm1181_vm0, %v1180_v40  ;;  %1039 = vmatpush3.bf16.msra.mxu1 %v1137_v56 }
  0x26   :  { %1044 = vmatprep.subr.bf16.mxu1 %v1180_v40 }
  0x27   :  { %999 = vmatpush3.bf16.msra.mxu0 %v1124_v52 }
  0x28   :  { %1000 = vmatprep.subr.bf16.mxu0 %v1125_v53 }
  0x2b   :  { %1001 = vmatpush3.bf16.msra.mxu0 %v1126_v54 }
  0x2c   :  { %1002 = vmatprep.subr.bf16.mxu0 %v1127_v55  ;;  %1041 = vmatmul.mubr.msk.bf16.vlgmr.msra.gmra.mrb[4].mxu1 %vm478_vm1, %v78_v1 }
  0x2d   :  { %1060 = vmatprep.mubr.msk.bf16.mxu1 %vm1181_vm0, %v1180_v40 }
  0x2f   :  { %1003 = vmatpush3.bf16.msra.mxu0 %v1128_v60 }
  0x30   :  { %1004 = vmatprep.subr.bf16.mxu0 %v1129_v63 }
  0x31   :  { %12 = vsyncpa [#allocation3], 0  ;;  %v1132_v4 = vld [vmem:[%s1470_s1 + $0x128] sm:$0xff]   ;;  %v1133_v5 = vld [vmem:[%s1470_s1 + $0x170] sm:$0xff]   ;;  %v76_v9 = vpack.c.bf16 %v56_v59, %v56_v59  ;;  %s1182_s0 = smov [#allocation2]  }
  0x32   :  { %v1134_v6 = vld [vmem:[%s1470_s1 + $0x130] sm:$0xff]   ;;  %v1135_v7 = vld [vmem:[%s1470_s1 + $0x178] sm:$0xff]   ;;  %v1139_v10 = vld [vmem:[%s1472_s3] sm:$0xff]   ;;  %s875_s20 = sshll.u32 %s1182_s0, 4  ;;  %s876_s20 = int_to_ptr.vmem [resolvable:$true] %s875_s20 }
  0x33   :  { %1005 = vmatpush3.bf16.msra.mxu0 %v1130_v2  ;;  %v1136_v8 = vld [vmem:[%s1470_s1 + $0x138] sm:$0xff]   ;;  %1045 = vmatpush3.bf16.msra.mxu1 %v1139_v10  ;;  %v1140_v11 = vld [vmem:[%s1472_s3 + $0x8] sm:$0xff]   ;;  %v1141_v12 = vld [vmem:[%s1472_s3 + $0x10] sm:$0xff]   ;;  %p1160_p1 = scmp.lt.s32.totalorder %s876_s20, %s876_s20 }
  0x34   :  { %1006 = vmatprep.subr.bf16.mxu0 %v1131_v3  ;;  %1046 = vmatprep.subr.bf16.mxu1 %v1180_v40  ;;  %v1142_v13 = vld [vmem:[%s1472_s3 + $0x18] sm:$0xff]   ;;  %v1143_v14 = vld [vmem:[%s1472_s3 + $0x20] sm:$0xff]   ;;  %v1144_v15 = vld [vmem:[%s1472_s3 + $0x28] sm:$0xff]  }
  0x35   :  { %v1145_v16 = vld [vmem:[%s1472_s3 + $0x30] sm:$0xff]   ;;  %v1146_v17 = vld [vmem:[%s1472_s3 + $0x38] sm:$0xff]   ;;  %v1147_v18 = vld [vmem:[%s1474_s5] sm:$0xff]  }
  0x36   :  { %v1148_v19 = vld [vmem:[%s1474_s5 + $0x8] sm:$0xff]   ;;  %v1149_v20 = vld [vmem:[%s1474_s5 + $0x10] sm:$0xff]   ;;  %v1150_v21 = vld [vmem:[%s1474_s5 + $0x18] sm:$0xff]  }
  0x37   :  { %1007 = vmatpush3.bf16.msra.mxu0 %v1132_v4  ;;  %1047 = vmatpush3.bf16.msra.mxu1 %v1140_v11  ;;  %v1151_v22 = vld [vmem:[%s1474_s5 + $0x20] sm:$0xff]   ;;  %v1152_v23 = vld [vmem:[%s1474_s5 + $0x28] sm:$0xff]   ;;  %v1153_v51 = vld [vmem:[%s1474_s5 + $0x30] sm:$0xff]  }
  0x38   :  { %1008 = vmatprep.subr.bf16.mxu0 %v1133_v5  ;;  %1048 = vmatprep.subr.bf16.mxu1 %v1180_v40  ;;  %v883_v26 = vld [vmem:[%s1471_s2] ss:$0 sm:$0xff]  ;;  %v1154_v52 = vld [vmem:[%s1474_s5 + $0x38] sm:$0xff]  }
  0x39   :  { %v934_v53 = vld [vmem:[%s1473_s4] ss:$0 sm:$0xff]  ;;  %s1155_s4 = scalar_lea.vmem %s876_s20, 32 }
  0x3a   :  { %p1156_p0 = scmp.ne.s32.totalorder %s876_s20, %s1155_s4  ;;  %p1161_p2 = scmp.lt.s32.totalorder %s1155_s4, %s1155_s4 }
  0x3b   :  { %1009 = vmatpush3.bf16.msra.mxu0 %v1134_v6  ;;  %1049 = vmatpush3.bf16.msra.mxu1 %v1141_v12 }
  0x3c   :  { %1010 = vmatprep.subr.bf16.mxu0 %v1135_v7  ;;  %1050 = vmatprep.subr.bf16.mxu1 %v1180_v40  ;;  %p1162_p3 = por %p1161_p2, %p1160_p1 }
  0x3e   :  { %p1163_p4 = pnand %p1162_p3, %p1156_p0 }
  0x3f   :  { %1011 = vmatpush3.bf16.msra.mxu0 %v1136_v8  ;;  %1051 = vmatpush3.bf16.msra.mxu1 %v1142_v13 }
  0x40   :  { %1064 = vmatprep.subr.bf16.mxu0 %v1180_v40  ;;  %1052 = vmatprep.subr.bf16.mxu1 %v1180_v40 }
  0x42   :  { %595 = vmatmul.mubr.bf16.vlgmr.msra.gmra.mrb[4].mxu0 %v76_v9 }
  0x43   :  { %1080 = vmatprep.mubr.msk.bf16.mxu0 %vm1181_vm0, %v1180_v40  ;;  %1053 = vmatpush3.bf16.msra.mxu1 %v1143_v14 }
  0x44   :  { %1054 = vmatprep.subr.bf16.mxu1 %v1180_v40  ;;  %1065 = vmatpush3.bf16.msra.mxu0 %v1147_v18 }
  0x45   :  { %1066 = vmatprep.subr.bf16.mxu0 %v1180_v40 }
  0x47   :  { %1055 = vmatpush3.bf16.msra.mxu1 %v1144_v15 }
  0x48   :  { %1056 = vmatprep.subr.bf16.mxu1 %v1180_v40  ;;  %1067 = vmatpush3.bf16.msra.mxu0 %v1148_v19 }
  0x49   :  { %1068 = vmatprep.subr.bf16.mxu0 %v1180_v40 }
  0x4b   :  { %1057 = vmatpush3.bf16.msra.mxu1 %v1145_v16 }
  0x4c   :  { %1058 = vmatprep.subr.bf16.mxu1 %v1180_v40  ;;  %1069 = vmatpush3.bf16.msra.mxu0 %v1149_v20 }
  0x4d   :  { %1070 = vmatprep.subr.bf16.mxu0 %v1180_v40 }
  0x4f   :  { %1059 = vmatpush3.bf16.msra.mxu1 %v1146_v17 }
  0x50   :  { %1071 = vmatpush3.bf16.msra.mxu0 %v1150_v21 }
  0x51   :  { %1072 = vmatprep.subr.bf16.mxu0 %v1180_v40 }
  0x54   :  { %1073 = vmatpush3.bf16.msra.mxu0 %v1151_v22 }
  0x55   :  { %1074 = vmatprep.subr.bf16.mxu0 %v1180_v40 }
  0x58   :  { %1075 = vmatpush3.bf16.msra.mxu0 %v1152_v23 }
  0x59   :  { %1076 = vmatprep.subr.bf16.mxu0 %v1180_v40 }
  0x5c   :  { %1077 = vmatpush3.bf16.msra.mxu0 %v1153_v51 }
  0x5d   :  { %1078 = vmatprep.subr.bf16.mxu0 %v1180_v40  ;;  %v943_v40 = vld [vmem:[%s1475_s6] ss:$0 sm:$0xff] }
  0x60   :  { %1079 = vmatpush3.bf16.msra.mxu0 %v1154_v52 }
  0xf5   :  { %v968_v24 = vpop.f32.mrb[0].mxu0 }
  0xf6   :  { %v969_v27 = vpop.f32.mrb[1].mxu0 }
  0xf7   :  { %v990_v25 = vpop.f32.mrb[0].mxu1  ;;  %v970_v29 = vadd.f32 %v969_v27, %v968_v24  ;;  %v971_v30 = vpop.f32.mrb[2].mxu0 }
  0xf8   :  { %v991_v28 = vpop.f32.mrb[1].mxu1  ;;  %v972_v33 = vpop.f32.mrb[3].mxu0 }
  0xf9   :  { %v992_v31 = vadd.f32 %v991_v28, %v990_v25  ;;  %v993_v32 = vpop.f32.mrb[2].mxu1  ;;  %v517_v35 = vadd.f32 %v970_v29, %v883_v26 }
  0xfa   :  { %v994_v34 = vpop.f32.mrb[3].mxu1 }
  0xfb   :  { %v557_v36 = vadd.f32 %v992_v31, %v517_v35 }
  0xff   :  { %v636_v37 = vpop.f32.mrb[4].mxu1 }
 0x100   :  { %v1042_v38 = vpop.f32.mrb[5].mxu1 }
 0x101   :  { %v639_v39 = vpop.f32.mrb[6].mxu1 }
 0x102   :  { %v1043_v41 = vpop.f32.mrb[7].mxu1 }
 0x115   :  { %v1012_v42 = vpop.f32.mrb[4].mxu0 }
 0x116   :  { %v1013_v43 = vpop.f32.mrb[5].mxu0 }
 0x117   :  { %v1014_v44 = vadd.f32 %v1013_v43, %v1012_v42  ;;  %v1015_v45 = vpop.f32.mrb[6].mxu0 }
 0x118   :  { %v1016_v46 = vpop.f32.mrb[7].mxu0 }
 0x119   :  { %v597_v47 = vadd.f32 %v1014_v44, %v557_v36 }
 0x11b   :  { %v637_v48 = vadd.f32 %v636_v37, %v597_v47 }
 0x11d   :  { %v642_v49 = vmax.f32 %v637_v48, 0.0 }
 0x11f   :  { %v643_v50 = vpack.c.bf16 %v642_v49, %v642_v49 }
 0x121   :  { %1061 = vmatmul.mubr.bf16.vlgmr.msra.gmra.mrb[8].mxu1 %v643_v50 }
 0x1f4   :  { %v749_v54 = vpop.f32.mrb[8].mxu1 }
 0x1f5   :  { %v750_v55 = vadd.f32 %v934_v53, %v749_v54  ;;  %v1062_v56 = vpop.f32.mrb[9].mxu1 }
 0x1f6   :  { %v752_v57 = vpop.f32.mrb[10].mxu1 }
 0x1f7   :  { %v755_v58 = vmax.f32 %v750_v55, 0.0  ;;  %v1063_v59 = vpop.f32.mrb[11].mxu1 }
 0x1f9   :  { %v756_v60 = vpack.c.bf16 %v755_v58, %v755_v58 }
 0x1fb   :  { %1081 = vmatmul.mubr.bf16.vlgmr.msra.gmra.mrb[8].mxu0 %v756_v60 }
 0x2ce   :  { %v862_v61 = vpop.f32.mrb[8].mxu0 }
 0x2cf   :  { %v863_v62 = vadd.f32 %v943_v40, %v862_v61  ;;  %v1082_v63 = vpop.f32.mrb[9].mxu0 }
 0x2d0   :  { %v865_v0 = vpop.f32.mrb[10].mxu0 }
 0x2d1   :  { %868 = vst [vmem:[#allocation2] sm:$0x3] %v863_v62  ;;  %v1083_v1 = vpop.f32.mrb[11].mxu0 }
 0x2d2   :  { %1166 = shalt.err (!%p1163_p4)
}
 0x2d3   :  { %s1167_s6 = scalar_lea.hbm %s1476_s7, 32 }
 0x2d4   :  { %p1168_p5 = scmp.ne.s32.totalorder %s1476_s7, %s1167_s6  ;;  %p1171_p6 = scmp.lt.u32.totalorder %s1167_s6, %s1476_s7 }
 0x2d6   :  { %p1173_p7 = pnand %p1171_p6, %p1168_p5 }
 0x2d8   :  { %1176 = shalt.err (!%p1173_p7)
}
 0x2d9   :  { %878 = dma.vmem_to_hbm [thread:$0]  %s876_s20, 32, %s1476_s7, [#allocation3]  }
 0x2da   :  { %1177 = dma.done.wait [#allocation3], 32  }
 0x2db   :  { %1178 = vsyncadd [#allocation3], 4294967264 }
 0x2dc   :  { %882 = vsyncpa [#allocation3], 1 }

</bundles_post_ra>
